<compile_context>
chip_gen: v7x
topology: tpu7x:2x2x1
jax: 0.10.0
libtpu: 0.0.40
codegen_flags: <defaults>
</compile_context>

<pallas_src>
import functools
import math

import jax
import jax.numpy as jnp
from jax import lax
from jax.experimental import pallas as pl
from jax.experimental.pallas import tpu as pltpu

BN_EPS = 1e-5
_INV_SQRT2 = 1.0 / math.sqrt(2.0)
_LANE = 128


def _mlp_fused_kernel(x_ref, w_ref, gb_ref, o_ref):
    """Whole MLP in one kernel invocation (everything VMEM-resident).

    x_ref:  (M, P)     padded input activations, f32
    w_ref:  (L, P, P)  per-layer weights stored (in, out), zero-padded
    gb_ref: (L, 2, P)  per-layer [gamma; beta], zero-padded
    o_ref:  (M, P)     padded output activations, f32, lane-dense
    """
    num_layers = w_ref.shape[0]
    inv_m = 1.0 / x_ref.shape[0]

    h = x_ref[...]                              # (M, P) f32
    for l in range(num_layers):                 # static unroll; L is small
        # Linear (bias omitted: cancelled exactly by training-mode BatchNorm).
        y = jnp.dot(h, w_ref[l], preferred_element_type=jnp.float32)

        # BatchNorm1d, training mode: biased variance over the batch axis.
        mean = jnp.sum(y, axis=0, keepdims=True) * inv_m
        centered = y - mean
        var = jnp.sum(centered * centered, axis=0, keepdims=True) * inv_m

        gb = gb_ref[l]                          # (2, P)
        gamma = gb[0:1, :]
        beta = gb[1:2, :]
        y = gamma * (centered * lax.rsqrt(var + BN_EPS)) + beta

        # Exact (erf-based) GELU, matching nn.GELU() default.
        h = 0.5 * y * (1.0 + lax.erf(y * _INV_SQRT2))

    o_ref[...] = h


def init_mlp_params(key, in_dim, out_dim, hidden_dim):
    """Deterministic parameter init mirroring the torch module's layer structure."""
    dims = [in_dim] + list(hidden_dim) + [out_dim]
    params = []
    for i in range(len(dims) - 1):
        fan_in, fan_out = dims[i], dims[i + 1]
        key, kw, kb = jax.random.split(key, 3)
        bound = 1.0 / math.sqrt(fan_in)
        # Stored as (in, out) == PyTorch weight (out, in) transposed.
        w = jax.random.uniform(kw, (fan_in, fan_out), jnp.float32, -bound, bound)
        b = jax.random.uniform(kb, (fan_out,), jnp.float32, -bound, bound)
        gamma = jnp.ones((fan_out,), jnp.float32)    # BatchNorm1d weight
        beta = jnp.zeros((fan_out,), jnp.float32)    # BatchNorm1d bias
        params.append((w, b, gamma, beta))
    return params


def pack_params(params):
    """Stack per-layer params into lane-dense slabs; drop the BN-cancelled bias."""
    max_dim = max(max(w.shape) for (w, _, _, _) in params)
    P = _LANE * pl.cdiv(max_dim, _LANE)
    L = len(params)
    w_stack = jnp.zeros((L, P, P), jnp.float32)
    # Padded gamma/beta stay 0 -> padded feature columns remain exactly 0 after BN+GELU.
    gb_stack = jnp.zeros((L, 2, P), jnp.float32)
    for l, (w, _b, gamma, beta) in enumerate(params):
        k, n = w.shape
        w_stack = w_stack.at[l, :k, :n].set(w)
        gb_stack = gb_stack.at[l, 0, :n].set(gamma)
        gb_stack = gb_stack.at[l, 1, :n].set(beta)
    return w_stack, gb_stack


@functools.partial(jax.jit, static_argnames=("out_dim",))
def mlp_forward(x, w_stack, gb_stack, *, out_dim):
    M, in_dim = x.shape
    L, P, _ = w_stack.shape
    x_pad = jnp.zeros((M, P), jnp.float32).at[:, :in_dim].set(x)

    out_pad = pl.pallas_call(
        _mlp_fused_kernel,
        out_shape=jax.ShapeDtypeStruct((M, P), jnp.float32),
        grid_spec=pltpu.PrefetchScalarGridSpec(
            num_scalar_prefetch=0,
            # Single grid step: BN couples the whole batch and layer l+1 needs every
            # feature of layer l, so the fused kernel cannot be sharded further.
            grid=(1,),
            in_specs=[
                pl.BlockSpec((M, P), lambda i: (0, 0)),
                pl.BlockSpec((L, P, P), lambda i: (0, 0, 0)),
                pl.BlockSpec((L, 2, P), lambda i: (0, 0, 0)),
            ],
            out_specs=pl.BlockSpec((M, P), lambda i: (0, 0)),
        ),
        compiler_params=pltpu.CompilerParams(
            dimension_semantics=("arbitrary",),
            # Whole problem (~0.4 MiB of weights + activations) is far under the default
            # scoped-VMEM limit on v5e/v6e/v7x; no explicit vmem_limit_bytes needed.
        ),
    )(x_pad, w_stack, gb_stack)

    return out_pad[:, :out_dim]


def mlp_reference(x, params):
    """Pure-JAX reference (includes the Linear bias, which BN cancels)."""
    for (w, b, gamma, beta) in params:
        y = x @ w + b
        mean = jnp.mean(y, axis=0, keepdims=True)
        var = jnp.mean((y - mean) ** 2, axis=0, keepdims=True)
        y = gamma * (y - mean) / jnp.sqrt(var + BN_EPS) + beta
        x = 0.5 * y * (1.0 + lax.erf(y / math.sqrt(2.0)))
    return x


if __name__ == "__main__":
    # Small shapes consistent with the module: MLP(in_dim=32, out_dim=32,
    # hidden_dim=[64, 128, 128, 128, 64]) applied to a (batch=8, in_dim=32) input.
    batch, in_dim, out_dim = 8, 32, 32
    hidden_dim = [64, 128, 128, 128, 64]

    key = jax.random.PRNGKey(0)
    key, kx = jax.random.split(key)
    x = jax.random.normal(kx, (batch, in_dim), jnp.float32)

    params = init_mlp_params(key, in_dim, out_dim, hidden_dim)
    w_stack, gb_stack = pack_params(params)

    out = mlp_forward(x, w_stack, gb_stack, out_dim=out_dim)
    out = jax.block_until_ready(out)

    ref = mlp_reference(x, params)
    assert out.shape == (batch, out_dim)
    assert jnp.allclose(out, ref, atol=1e-4, rtol=1e-4), "mismatch vs reference"

    print("KERNEL_OK")
</pallas_src>

<mosaic_0001>
module attributes {stable_mosaic.version = 11 : i64} {
  func.func @_mlp_fused_kernel(%arg0: i32, %arg1: memref<8x128xf32, #tpu.memory_space<vmem>>, %arg2: memref<6x128x128xf32, #tpu.memory_space<vmem>>, %arg3: memref<6x2x128xf32, #tpu.memory_space<vmem>>, %arg4: memref<8x128xf32, #tpu.memory_space<vmem>>) attributes {dimension_semantics = [#tpu.dimension_semantics<arbitrary>], iteration_bounds = array<i64: 1>, scalar_prefetch = 0 : i64, scratch_operands = 0 : i64, tpu.core_type = #tpu.core_type<tc>, window_params = [{pipeline_mode = #tpu.pipeline_mode<synchronous>, transform_indices = @transform_0, window_bounds = array<i64: 8, 128>}, {pipeline_mode = #tpu.pipeline_mode<synchronous>, transform_indices = @transform_1, window_bounds = array<i64: 6, 128, 128>}, {pipeline_mode = #tpu.pipeline_mode<synchronous>, transform_indices = @transform_2, window_bounds = array<i64: 6, 2, 128>}, {pipeline_mode = #tpu.pipeline_mode<synchronous>, transform_indices = @transform_3, window_bounds = array<i64: 8, 128>}]} {
    %c0 = arith.constant 0 : index
    %c0_0 = arith.constant 0 : index
    %0 = vector.load %arg1[%c0, %c0_0] : memref<8x128xf32, #tpu.memory_space<vmem>>, vector<8x128xf32>
    %c0_1 = arith.constant 0 : index
    %c0_2 = arith.constant 0 : index
    %c0_3 = arith.constant 0 : index
    %1 = vector.load %arg2[%c0_1, %c0_2, %c0_3] : memref<6x128x128xf32, #tpu.memory_space<vmem>>, vector<1x128x128xf32>
    %2 = vector.shape_cast %1 : vector<1x128x128xf32> to vector<128x128xf32>
    %cst = arith.constant dense<0.000000e+00> : vector<8x128xf32>
    %3 = tpu.matmul %0, %2, %cst {dimension_numbers = #tpu.dot_dimension_numbers<[1], [0], [0], [1], [0, 0, 1, 1], [], []>} : vector<8x128xf32>, vector<128x128xf32>, vector<8x128xf32> -> vector<8x128xf32>
    %cst_4 = arith.constant dense<0.000000e+00> : vector<128xf32>
    %4 = vector.multi_reduction <add>, %3, %cst_4 [0] : vector<8x128xf32> to vector<128xf32>
    %5 = vector.shape_cast %4 : vector<128xf32> to vector<1x128xf32>
    %cst_5 = arith.constant 1.250000e-01 : f32
    %6 = vector.broadcast %cst_5 : f32 to vector<1x128xf32>
    %7 = arith.mulf %5, %6 : vector<1x128xf32>
    %8 = vector.broadcast %7 : vector<1x128xf32> to vector<8x128xf32>
    %9 = arith.subf %3, %8 : vector<8x128xf32>
    %10 = arith.mulf %9, %9 : vector<8x128xf32>
    %cst_6 = arith.constant dense<0.000000e+00> : vector<128xf32>
    %11 = vector.multi_reduction <add>, %10, %cst_6 [0] : vector<8x128xf32> to vector<128xf32>
    %12 = vector.shape_cast %11 : vector<128xf32> to vector<1x128xf32>
    %cst_7 = arith.constant 1.250000e-01 : f32
    %13 = vector.broadcast %cst_7 : f32 to vector<1x128xf32>
    %14 = arith.mulf %12, %13 : vector<1x128xf32>
    %c0_8 = arith.constant 0 : index
    %c0_9 = arith.constant 0 : index
    %c0_10 = arith.constant 0 : index
    %15 = vector.load %arg3[%c0_8, %c0_9, %c0_10] : memref<6x2x128xf32, #tpu.memory_space<vmem>>, vector<1x2x128xf32>
    %16 = vector.shape_cast %15 : vector<1x2x128xf32> to vector<2x128xf32>
    %17 = vector.extract_strided_slice %16 {offsets = [0, 0], sizes = [1, 128], strides = [1, 1]} : vector<2x128xf32> to vector<1x128xf32>
    %18 = vector.extract_strided_slice %16 {offsets = [1, 0], sizes = [1, 128], strides = [1, 1]} : vector<2x128xf32> to vector<1x128xf32>
    %cst_11 = arith.constant 9.99999974E-6 : f32
    %19 = vector.broadcast %cst_11 : f32 to vector<1x128xf32>
    %20 = arith.addf %14, %19 : vector<1x128xf32>
    %21 = math.rsqrt %20 : vector<1x128xf32>
    %22 = vector.broadcast %21 : vector<1x128xf32> to vector<8x128xf32>
    %23 = arith.mulf %9, %22 : vector<8x128xf32>
    %24 = vector.broadcast %17 : vector<1x128xf32> to vector<8x128xf32>
    %25 = arith.mulf %24, %23 : vector<8x128xf32>
    %26 = vector.broadcast %18 : vector<1x128xf32> to vector<8x128xf32>
    %27 = arith.addf %25, %26 : vector<8x128xf32>
    %cst_12 = arith.constant 5.000000e-01 : f32
    %28 = vector.broadcast %cst_12 : f32 to vector<8x128xf32>
    %29 = arith.mulf %28, %27 : vector<8x128xf32>
    %cst_13 = arith.constant 0.707106769 : f32
    %30 = vector.broadcast %cst_13 : f32 to vector<8x128xf32>
    %31 = arith.mulf %27, %30 : vector<8x128xf32>
    %32 = math.erf %31 : vector<8x128xf32>
    %cst_14 = arith.constant 1.000000e+00 : f32
    %33 = vector.broadcast %cst_14 : f32 to vector<8x128xf32>
    %34 = arith.addf %33, %32 : vector<8x128xf32>
    %35 = arith.mulf %29, %34 : vector<8x128xf32>
    %c1 = arith.constant 1 : index
    %c0_15 = arith.constant 0 : index
    %c0_16 = arith.constant 0 : index
    %36 = vector.load %arg2[%c1, %c0_15, %c0_16] : memref<6x128x128xf32, #tpu.memory_space<vmem>>, vector<1x128x128xf32>
    %37 = vector.shape_cast %36 : vector<1x128x128xf32> to vector<128x128xf32>
    %cst_17 = arith.constant dense<0.000000e+00> : vector<8x128xf32>
    %38 = tpu.matmul %35, %37, %cst_17 {dimension_numbers = #tpu.dot_dimension_numbers<[1], [0], [0], [1], [0, 0, 1, 1], [], []>} : vector<8x128xf32>, vector<128x128xf32>, vector<8x128xf32> -> vector<8x128xf32>
    %cst_18 = arith.constant dense<0.000000e+00> : vector<128xf32>
    %39 = vector.multi_reduction <add>, %38, %cst_18 [0] : vector<8x128xf32> to vector<128xf32>
    %40 = vector.shape_cast %39 : vector<128xf32> to vector<1x128xf32>
    %cst_19 = arith.constant 1.250000e-01 : f32
    %41 = vector.broadcast %cst_19 : f32 to vector<1x128xf32>
    %42 = arith.mulf %40, %41 : vector<1x128xf32>
    %43 = vector.broadcast %42 : vector<1x128xf32> to vector<8x128xf32>
    %44 = arith.subf %38, %43 : vector<8x128xf32>
    %45 = arith.mulf %44, %44 : vector<8x128xf32>
    %cst_20 = arith.constant dense<0.000000e+00> : vector<128xf32>
    %46 = vector.multi_reduction <add>, %45, %cst_20 [0] : vector<8x128xf32> to vector<128xf32>
    %47 = vector.shape_cast %46 : vector<128xf32> to vector<1x128xf32>
    %cst_21 = arith.constant 1.250000e-01 : f32
    %48 = vector.broadcast %cst_21 : f32 to vector<1x128xf32>
    %49 = arith.mulf %47, %48 : vector<1x128xf32>
    %c1_22 = arith.constant 1 : index
    %c0_23 = arith.constant 0 : index
    %c0_24 = arith.constant 0 : index
    %50 = vector.load %arg3[%c1_22, %c0_23, %c0_24] : memref<6x2x128xf32, #tpu.memory_space<vmem>>, vector<1x2x128xf32>
    %51 = vector.shape_cast %50 : vector<1x2x128xf32> to vector<2x128xf32>
    %52 = vector.extract_strided_slice %51 {offsets = [0, 0], sizes = [1, 128], strides = [1, 1]} : vector<2x128xf32> to vector<1x128xf32>
    %53 = vector.extract_strided_slice %51 {offsets = [1, 0], sizes = [1, 128], strides = [1, 1]} : vector<2x128xf32> to vector<1x128xf32>
    %cst_25 = arith.constant 9.99999974E-6 : f32
    %54 = vector.broadcast %cst_25 : f32 to vector<1x128xf32>
    %55 = arith.addf %49, %54 : vector<1x128xf32>
    %56 = math.rsqrt %55 : vector<1x128xf32>
    %57 = vector.broadcast %56 : vector<1x128xf32> to vector<8x128xf32>
    %58 = arith.mulf %44, %57 : vector<8x128xf32>
    %59 = vector.broadcast %52 : vector<1x128xf32> to vector<8x128xf32>
    %60 = arith.mulf %59, %58 : vector<8x128xf32>
    %61 = vector.broadcast %53 : vector<1x128xf32> to vector<8x128xf32>
    %62 = arith.addf %60, %61 : vector<8x128xf32>
    %cst_26 = arith.constant 5.000000e-01 : f32
    %63 = vector.broadcast %cst_26 : f32 to vector<8x128xf32>
    %64 = arith.mulf %63, %62 : vector<8x128xf32>
    %cst_27 = arith.constant 0.707106769 : f32
    %65 = vector.broadcast %cst_27 : f32 to vector<8x128xf32>
    %66 = arith.mulf %62, %65 : vector<8x128xf32>
    %67 = math.erf %66 : vector<8x128xf32>
    %cst_28 = arith.constant 1.000000e+00 : f32
    %68 = vector.broadcast %cst_28 : f32 to vector<8x128xf32>
    %69 = arith.addf %68, %67 : vector<8x128xf32>
    %70 = arith.mulf %64, %69 : vector<8x128xf32>
    %c2 = arith.constant 2 : index
    %c0_29 = arith.constant 0 : index
    %c0_30 = arith.constant 0 : index
    %71 = vector.load %arg2[%c2, %c0_29, %c0_30] : memref<6x128x128xf32, #tpu.memory_space<vmem>>, vector<1x128x128xf32>
    %72 = vector.shape_cast %71 : vector<1x128x128xf32> to vector<128x128xf32>
    %cst_31 = arith.constant dense<0.000000e+00> : vector<8x128xf32>
    %73 = tpu.matmul %70, %72, %cst_31 {dimension_numbers = #tpu.dot_dimension_numbers<[1], [0], [0], [1], [0, 0, 1, 1], [], []>} : vector<8x128xf32>, vector<128x128xf32>, vector<8x128xf32> -> vector<8x128xf32>
    %cst_32 = arith.constant dense<0.000000e+00> : vector<128xf32>
    %74 = vector.multi_reduction <add>, %73, %cst_32 [0] : vector<8x128xf32> to vector<128xf32>
    %75 = vector.shape_cast %74 : vector<128xf32> to vector<1x128xf32>
    %cst_33 = arith.constant 1.250000e-01 : f32
    %76 = vector.broadcast %cst_33 : f32 to vector<1x128xf32>
    %77 = arith.mulf %75, %76 : vector<1x128xf32>
    %78 = vector.broadcast %77 : vector<1x128xf32> to vector<8x128xf32>
    %79 = arith.subf %73, %78 : vector<8x128xf32>
    %80 = arith.mulf %79, %79 : vector<8x128xf32>
    %cst_34 = arith.constant dense<0.000000e+00> : vector<128xf32>
    %81 = vector.multi_reduction <add>, %80, %cst_34 [0] : vector<8x128xf32> to vector<128xf32>
    %82 = vector.shape_cast %81 : vector<128xf32> to vector<1x128xf32>
    %cst_35 = arith.constant 1.250000e-01 : f32
    %83 = vector.broadcast %cst_35 : f32 to vector<1x128xf32>
    %84 = arith.mulf %82, %83 : vector<1x128xf32>
    %c2_36 = arith.constant 2 : index
    %c0_37 = arith.constant 0 : index
    %c0_38 = arith.constant 0 : index
    %85 = vector.load %arg3[%c2_36, %c0_37, %c0_38] : memref<6x2x128xf32, #tpu.memory_space<vmem>>, vector<1x2x128xf32>
    %86 = vector.shape_cast %85 : vector<1x2x128xf32> to vector<2x128xf32>
    %87 = vector.extract_strided_slice %86 {offsets = [0, 0], sizes = [1, 128], strides = [1, 1]} : vector<2x128xf32> to vector<1x128xf32>
    %88 = vector.extract_strided_slice %86 {offsets = [1, 0], sizes = [1, 128], strides = [1, 1]} : vector<2x128xf32> to vector<1x128xf32>
    %cst_39 = arith.constant 9.99999974E-6 : f32
    %89 = vector.broadcast %cst_39 : f32 to vector<1x128xf32>
    %90 = arith.addf %84, %89 : vector<1x128xf32>
    %91 = math.rsqrt %90 : vector<1x128xf32>
    %92 = vector.broadcast %91 : vector<1x128xf32> to vector<8x128xf32>
    %93 = arith.mulf %79, %92 : vector<8x128xf32>
    %94 = vector.broadcast %87 : vector<1x128xf32> to vector<8x128xf32>
    %95 = arith.mulf %94, %93 : vector<8x128xf32>
    %96 = vector.broadcast %88 : vector<1x128xf32> to vector<8x128xf32>
    %97 = arith.addf %95, %96 : vector<8x128xf32>
    %cst_40 = arith.constant 5.000000e-01 : f32
    %98 = vector.broadcast %cst_40 : f32 to vector<8x128xf32>
    %99 = arith.mulf %98, %97 : vector<8x128xf32>
    %cst_41 = arith.constant 0.707106769 : f32
    %100 = vector.broadcast %cst_41 : f32 to vector<8x128xf32>
    %101 = arith.mulf %97, %100 : vector<8x128xf32>
    %102 = math.erf %101 : vector<8x128xf32>
    %cst_42 = arith.constant 1.000000e+00 : f32
    %103 = vector.broadcast %cst_42 : f32 to vector<8x128xf32>
    %104 = arith.addf %103, %102 : vector<8x128xf32>
    %105 = arith.mulf %99, %104 : vector<8x128xf32>
    %c3 = arith.constant 3 : index
    %c0_43 = arith.constant 0 : index
    %c0_44 = arith.constant 0 : index
    %106 = vector.load %arg2[%c3, %c0_43, %c0_44] : memref<6x128x128xf32, #tpu.memory_space<vmem>>, vector<1x128x128xf32>
    %107 = vector.shape_cast %106 : vector<1x128x128xf32> to vector<128x128xf32>
    %cst_45 = arith.constant dense<0.000000e+00> : vector<8x128xf32>
    %108 = tpu.matmul %105, %107, %cst_45 {dimension_numbers = #tpu.dot_dimension_numbers<[1], [0], [0], [1], [0, 0, 1, 1], [], []>} : vector<8x128xf32>, vector<128x128xf32>, vector<8x128xf32> -> vector<8x128xf32>
    %cst_46 = arith.constant dense<0.000000e+00> : vector<128xf32>
    %109 = vector.multi_reduction <add>, %108, %cst_46 [0] : vector<8x128xf32> to vector<128xf32>
    %110 = vector.shape_cast %109 : vector<128xf32> to vector<1x128xf32>
    %cst_47 = arith.constant 1.250000e-01 : f32
    %111 = vector.broadcast %cst_47 : f32 to vector<1x128xf32>
    %112 = arith.mulf %110, %111 : vector<1x128xf32>
    %113 = vector.broadcast %112 : vector<1x128xf32> to vector<8x128xf32>
    %114 = arith.subf %108, %113 : vector<8x128xf32>
    %115 = arith.mulf %114, %114 : vector<8x128xf32>
    %cst_48 = arith.constant dense<0.000000e+00> : vector<128xf32>
    %116 = vector.multi_reduction <add>, %115, %cst_48 [0] : vector<8x128xf32> to vector<128xf32>
    %117 = vector.shape_cast %116 : vector<128xf32> to vector<1x128xf32>
    %cst_49 = arith.constant 1.250000e-01 : f32
    %118 = vector.broadcast %cst_49 : f32 to vector<1x128xf32>
    %119 = arith.mulf %117, %118 : vector<1x128xf32>
    %c3_50 = arith.constant 3 : index
    %c0_51 = arith.constant 0 : index
    %c0_52 = arith.constant 0 : index
    %120 = vector.load %arg3[%c3_50, %c0_51, %c0_52] : memref<6x2x128xf32, #tpu.memory_space<vmem>>, vector<1x2x128xf32>
    %121 = vector.shape_cast %120 : vector<1x2x128xf32> to vector<2x128xf32>
    %122 = vector.extract_strided_slice %121 {offsets = [0, 0], sizes = [1, 128], strides = [1, 1]} : vector<2x128xf32> to vector<1x128xf32>
    %123 = vector.extract_strided_slice %121 {offsets = [1, 0], sizes = [1, 128], strides = [1, 1]} : vector<2x128xf32> to vector<1x128xf32>
    %cst_53 = arith.constant 9.99999974E-6 : f32
    %124 = vector.broadcast %cst_53 : f32 to vector<1x128xf32>
    %125 = arith.addf %119, %124 : vector<1x128xf32>
    %126 = math.rsqrt %125 : vector<1x128xf32>
    %127 = vector.broadcast %126 : vector<1x128xf32> to vector<8x128xf32>
    %128 = arith.mulf %114, %127 : vector<8x128xf32>
    %129 = vector.broadcast %122 : vector<1x128xf32> to vector<8x128xf32>
    %130 = arith.mulf %129, %128 : vector<8x128xf32>
    %131 = vector.broadcast %123 : vector<1x128xf32> to vector<8x128xf32>
    %132 = arith.addf %130, %131 : vector<8x128xf32>
    %cst_54 = arith.constant 5.000000e-01 : f32
    %133 = vector.broadcast %cst_54 : f32 to vector<8x128xf32>
    %134 = arith.mulf %133, %132 : vector<8x128xf32>
    %cst_55 = arith.constant 0.707106769 : f32
    %135 = vector.broadcast %cst_55 : f32 to vector<8x128xf32>
    %136 = arith.mulf %132, %135 : vector<8x128xf32>
    %137 = math.erf %136 : vector<8x128xf32>
    %cst_56 = arith.constant 1.000000e+00 : f32
    %138 = vector.broadcast %cst_56 : f32 to vector<8x128xf32>
    %139 = arith.addf %138, %137 : vector<8x128xf32>
    %140 = arith.mulf %134, %139 : vector<8x128xf32>
    %c4 = arith.constant 4 : index
    %c0_57 = arith.constant 0 : index
    %c0_58 = arith.constant 0 : index
    %141 = vector.load %arg2[%c4, %c0_57, %c0_58] : memref<6x128x128xf32, #tpu.memory_space<vmem>>, vector<1x128x128xf32>
    %142 = vector.shape_cast %141 : vector<1x128x128xf32> to vector<128x128xf32>
    %cst_59 = arith.constant dense<0.000000e+00> : vector<8x128xf32>
    %143 = tpu.matmul %140, %142, %cst_59 {dimension_numbers = #tpu.dot_dimension_numbers<[1], [0], [0], [1], [0, 0, 1, 1], [], []>} : vector<8x128xf32>, vector<128x128xf32>, vector<8x128xf32> -> vector<8x128xf32>
    %cst_60 = arith.constant dense<0.000000e+00> : vector<128xf32>
    %144 = vector.multi_reduction <add>, %143, %cst_60 [0] : vector<8x128xf32> to vector<128xf32>
    %145 = vector.shape_cast %144 : vector<128xf32> to vector<1x128xf32>
    %cst_61 = arith.constant 1.250000e-01 : f32
    %146 = vector.broadcast %cst_61 : f32 to vector<1x128xf32>
    %147 = arith.mulf %145, %146 : vector<1x128xf32>
    %148 = vector.broadcast %147 : vector<1x128xf32> to vector<8x128xf32>
    %149 = arith.subf %143, %148 : vector<8x128xf32>
    %150 = arith.mulf %149, %149 : vector<8x128xf32>
    %cst_62 = arith.constant dense<0.000000e+00> : vector<128xf32>
    %151 = vector.multi_reduction <add>, %150, %cst_62 [0] : vector<8x128xf32> to vector<128xf32>
    %152 = vector.shape_cast %151 : vector<128xf32> to vector<1x128xf32>
    %cst_63 = arith.constant 1.250000e-01 : f32
    %153 = vector.broadcast %cst_63 : f32 to vector<1x128xf32>
    %154 = arith.mulf %152, %153 : vector<1x128xf32>
    %c4_64 = arith.constant 4 : index
    %c0_65 = arith.constant 0 : index
    %c0_66 = arith.constant 0 : index
    %155 = vector.load %arg3[%c4_64, %c0_65, %c0_66] : memref<6x2x128xf32, #tpu.memory_space<vmem>>, vector<1x2x128xf32>
    %156 = vector.shape_cast %155 : vector<1x2x128xf32> to vector<2x128xf32>
    %157 = vector.extract_strided_slice %156 {offsets = [0, 0], sizes = [1, 128], strides = [1, 1]} : vector<2x128xf32> to vector<1x128xf32>
    %158 = vector.extract_strided_slice %156 {offsets = [1, 0], sizes = [1, 128], strides = [1, 1]} : vector<2x128xf32> to vector<1x128xf32>
    %cst_67 = arith.constant 9.99999974E-6 : f32
    %159 = vector.broadcast %cst_67 : f32 to vector<1x128xf32>
    %160 = arith.addf %154, %159 : vector<1x128xf32>
    %161 = math.rsqrt %160 : vector<1x128xf32>
    %162 = vector.broadcast %161 : vector<1x128xf32> to vector<8x128xf32>
    %163 = arith.mulf %149, %162 : vector<8x128xf32>
    %164 = vector.broadcast %157 : vector<1x128xf32> to vector<8x128xf32>
    %165 = arith.mulf %164, %163 : vector<8x128xf32>
    %166 = vector.broadcast %158 : vector<1x128xf32> to vector<8x128xf32>
    %167 = arith.addf %165, %166 : vector<8x128xf32>
    %cst_68 = arith.constant 5.000000e-01 : f32
    %168 = vector.broadcast %cst_68 : f32 to vector<8x128xf32>
    %169 = arith.mulf %168, %167 : vector<8x128xf32>
    %cst_69 = arith.constant 0.707106769 : f32
    %170 = vector.broadcast %cst_69 : f32 to vector<8x128xf32>
    %171 = arith.mulf %167, %170 : vector<8x128xf32>
    %172 = math.erf %171 : vector<8x128xf32>
    %cst_70 = arith.constant 1.000000e+00 : f32
    %173 = vector.broadcast %cst_70 : f32 to vector<8x128xf32>
    %174 = arith.addf %173, %172 : vector<8x128xf32>
    %175 = arith.mulf %169, %174 : vector<8x128xf32>
    %c5 = arith.constant 5 : index
    %c0_71 = arith.constant 0 : index
    %c0_72 = arith.constant 0 : index
    %176 = vector.load %arg2[%c5, %c0_71, %c0_72] : memref<6x128x128xf32, #tpu.memory_space<vmem>>, vector<1x128x128xf32>
    %177 = vector.shape_cast %176 : vector<1x128x128xf32> to vector<128x128xf32>
    %cst_73 = arith.constant dense<0.000000e+00> : vector<8x128xf32>
    %178 = tpu.matmul %175, %177, %cst_73 {dimension_numbers = #tpu.dot_dimension_numbers<[1], [0], [0], [1], [0, 0, 1, 1], [], []>} : vector<8x128xf32>, vector<128x128xf32>, vector<8x128xf32> -> vector<8x128xf32>
    %cst_74 = arith.constant dense<0.000000e+00> : vector<128xf32>
    %179 = vector.multi_reduction <add>, %178, %cst_74 [0] : vector<8x128xf32> to vector<128xf32>
    %180 = vector.shape_cast %179 : vector<128xf32> to vector<1x128xf32>
    %cst_75 = arith.constant 1.250000e-01 : f32
    %181 = vector.broadcast %cst_75 : f32 to vector<1x128xf32>
    %182 = arith.mulf %180, %181 : vector<1x128xf32>
    %183 = vector.broadcast %182 : vector<1x128xf32> to vector<8x128xf32>
    %184 = arith.subf %178, %183 : vector<8x128xf32>
    %185 = arith.mulf %184, %184 : vector<8x128xf32>
    %cst_76 = arith.constant dense<0.000000e+00> : vector<128xf32>
    %186 = vector.multi_reduction <add>, %185, %cst_76 [0] : vector<8x128xf32> to vector<128xf32>
    %187 = vector.shape_cast %186 : vector<128xf32> to vector<1x128xf32>
    %cst_77 = arith.constant 1.250000e-01 : f32
    %188 = vector.broadcast %cst_77 : f32 to vector<1x128xf32>
    %189 = arith.mulf %187, %188 : vector<1x128xf32>
    %c5_78 = arith.constant 5 : index
    %c0_79 = arith.constant 0 : index
    %c0_80 = arith.constant 0 : index
    %190 = vector.load %arg3[%c5_78, %c0_79, %c0_80] : memref<6x2x128xf32, #tpu.memory_space<vmem>>, vector<1x2x128xf32>
    %191 = vector.shape_cast %190 : vector<1x2x128xf32> to vector<2x128xf32>
    %192 = vector.extract_strided_slice %191 {offsets = [0, 0], sizes = [1, 128], strides = [1, 1]} : vector<2x128xf32> to vector<1x128xf32>
    %193 = vector.extract_strided_slice %191 {offsets = [1, 0], sizes = [1, 128], strides = [1, 1]} : vector<2x128xf32> to vector<1x128xf32>
    %cst_81 = arith.constant 9.99999974E-6 : f32
    %194 = vector.broadcast %cst_81 : f32 to vector<1x128xf32>
    %195 = arith.addf %189, %194 : vector<1x128xf32>
    %196 = math.rsqrt %195 : vector<1x128xf32>
    %197 = vector.broadcast %196 : vector<1x128xf32> to vector<8x128xf32>
    %198 = arith.mulf %184, %197 : vector<8x128xf32>
    %199 = vector.broadcast %192 : vector<1x128xf32> to vector<8x128xf32>
    %200 = arith.mulf %199, %198 : vector<8x128xf32>
    %201 = vector.broadcast %193 : vector<1x128xf32> to vector<8x128xf32>
    %202 = arith.addf %200, %201 : vector<8x128xf32>
    %cst_82 = arith.constant 5.000000e-01 : f32
    %203 = vector.broadcast %cst_82 : f32 to vector<8x128xf32>
    %204 = arith.mulf %203, %202 : vector<8x128xf32>
    %cst_83 = arith.constant 0.707106769 : f32
    %205 = vector.broadcast %cst_83 : f32 to vector<8x128xf32>
    %206 = arith.mulf %202, %205 : vector<8x128xf32>
    %207 = math.erf %206 : vector<8x128xf32>
    %cst_84 = arith.constant 1.000000e+00 : f32
    %208 = vector.broadcast %cst_84 : f32 to vector<8x128xf32>
    %209 = arith.addf %208, %207 : vector<8x128xf32>
    %210 = arith.mulf %204, %209 : vector<8x128xf32>
    %c0_85 = arith.constant 0 : index
    %c0_86 = arith.constant 0 : index
    %211 = vector.load %arg4[%c0_85, %c0_86] : memref<8x128xf32, #tpu.memory_space<vmem>>, vector<8x128xf32>
    tpu.vector_store %arg4[%c0_85, %c0_86], %210 {strides = array<i32>} : memref<8x128xf32, #tpu.memory_space<vmem>>, vector<8x128xf32>,
    return
  }
  func.func @transform_0(%arg0: i32) -> (i32, i32) {
    %c0_i32 = arith.constant 0 : i32
    %c0_i32_0 = arith.constant 0 : i32
    %c0_i32_1 = arith.constant 0 : i32
    return %c0_i32, %c0_i32_0 : i32, i32
  }
  func.func @transform_1(%arg0: i32) -> (i32, i32, i32) {
    %c0_i32 = arith.constant 0 : i32
    %c0_i32_0 = arith.constant 0 : i32
    %c0_i32_1 = arith.constant 0 : i32
    %c0_i32_2 = arith.constant 0 : i32
    return %c0_i32, %c0_i32_0, %c0_i32_1 : i32, i32, i32
  }
  func.func @transform_2(%arg0: i32) -> (i32, i32, i32) {
    %c0_i32 = arith.constant 0 : i32
    %c0_i32_0 = arith.constant 0 : i32
    %c0_i32_1 = arith.constant 0 : i32
    %c0_i32_2 = arith.constant 0 : i32
    return %c0_i32, %c0_i32_0, %c0_i32_1 : i32, i32, i32
  }
  func.func @transform_3(%arg0: i32) -> (i32, i32) {
    %c0_i32 = arith.constant 0 : i32
    %c0_i32_0 = arith.constant 0 : i32
    %c0_i32_1 = arith.constant 0 : i32
    return %c0_i32, %c0_i32_0 : i32, i32
  }
}

</mosaic_0001>

<bundles_post_ra>
// kernel: mlp_forward.1
= control target key start
LH: loop header
LB: loop body
LE: loop exit
PB: predicated region body
PF: predicated region fallthrough
CT: control target
= control target key end

     0   :  { %8 = vsyncpa [#allocation3], 0  ;;  %s1470_s0 = inlined_call_operand.vmem [shape: f32[8,128], index: 0, kind: input, shape index: {}]   ;;  %s1471_s1 = inlined_call_operand.hbm [shape: f32[6,128,128], index: 1, kind: input, shape index: {}]   ;;  %s1472_s2 = inlined_call_operand.vmem [shape: f32[6,2,128], index: 2, kind: input, shape index: {}]   ;;  %s1473_s3 = inlined_call_operand.hbm [shape: f32[8,128], index: 3, kind: output, shape index: {}]  }
   0x1   :  { %9 = vsyncpa [#allocation4], 0  ;;  %s1322_s12 = smov [#allocation2]   ;;  %s1274_s16 = scalar_lea.hbm %s1471_s1, 12288 }
   0x2   :  { %s17_s13 = sshll.u32 %s1322_s12, 4  ;;  %p1275_p0 = scmp.ne.s32.totalorder %s1471_s1, %s1274_s16  ;;  %s18_s13 = int_to_ptr.vmem [resolvable:$true] %s17_s13 }
   0x3   :  { %p1278_p1 = scmp.lt.u32.totalorder %s1274_s16, %s1471_s1 }
   0x5   :  { %p1280_p2 = pnand %p1278_p1, %p1275_p0 }
   0x7   :  { %1283 = shalt.err (!%p1280_p2)
}
   0x8   :  { %s1284_s21 = scalar_lea.vmem %s18_s13, 12288  ;;  %p1289_p4 = scmp.lt.s32.totalorder %s18_s13, %s18_s13 }
   0x9   :  { %p1285_p3 = scmp.ne.s32.totalorder %s18_s13, %s1284_s21  ;;  %p1290_p5 = scmp.lt.s32.totalorder %s1284_s21, %s1284_s21 }
   0xb   :  { %p1291_p6 = por %p1290_p5, %p1289_p4 }
   0xd   :  { %p1292_p7 = pnand %p1291_p6, %p1285_p3 }
   0xf   :  { %1295 = shalt.err (!%p1292_p7)
}
  0x10   :  { %s1323_s22 = smov 128   ;;  %s1324_s23 = smov 8  }
  0x11   :  { %23 = dma.hbm_to_vmem [thread:$0]  %s1471_s1, 12288, %s18_s13, [#allocation3], %s1323_s22, %s1323_s22, %s1324_s23  }
  0x12   :  { %1318 = dma.done.wait [#allocation3], 12288  }
  0x13   :  { %1319 = vsyncadd [#allocation3], 4294955008  ;;  %v1325_v0 = vmov 0.0|0.0   ;;  %vm1326_vm0 = vmmov 0   ;;  %v1327_v1 = vmov 0.0   ;;  %v30_v2 = vld [vmem:[#allocation2] sm:$0xff] }
  0x14   :  { %1099 = vmatprep.subr.bf16.mxu0 %v1325_v0  ;;  %921 = vmatprep.mubr.msk.f32.mxu0 %vm1326_vm0, %v1327_v1  ;;  %v31_v3 = vld [vmem:[#allocation2 + $0x8] sm:$0xff]  ;;  %v32_v4 = vld [vmem:[#allocation2 + $0x10] sm:$0xff]  ;;  %v33_v6 = vld [vmem:[#allocation2 + $0x18] sm:$0xff]  ;;  %s1328_s11 = smov [#allocation5]  }
  0x15   :  { %1123 = vmatprep.subr.bf16.mxu1 %v1325_v0  ;;  %956 = vmatprep.mubr.msk.f32.mxu1 %vm1326_vm0, %v1327_v1  ;;  %v1100_v5 = vpack.c.bf16 %v31_v3, %v30_v2  ;;  %v1103_v7 = vpack.c.bf16 %v33_v6, %v32_v4  ;;  %v34_v8 = vld [vmem:[#allocation2 + $0x20] sm:$0xff]  ;;  %v35_v9 = vld [vmem:[#allocation2 + $0x28] sm:$0xff]  ;;  %v36_v11 = vld [vmem:[#allocation2 + $0x30] sm:$0xff]  ;;  %s773_s12 = sshll.u32 %s1328_s11, 4  ;;  %s774_s12 = int_to_ptr.vmem [resolvable:$true] %s773_s12 }
  0x16   :  { %v1106_v10 = vpack.c.bf16 %v35_v9, %v34_v8  ;;  %v37_v12 = vld [vmem:[#allocation2 + $0x38] sm:$0xff]  ;;  %v38_v14 = vld [vmem:[#allocation2 + $0x40] sm:$0xff]  ;;  %v39_v15 = vld [vmem:[#allocation2 + $0x48] sm:$0xff]  ;;  %s1296_s13 = scalar_lea.vmem %s774_s12, 128  ;;  %p1301_p9 = scmp.lt.s32.totalorder %s774_s12, %s774_s12 }
  0x17   :  { %1101 = vmatpush3.bf16.msra.mxu0 %v1100_v5  ;;  %v1109_v13 = vpack.c.bf16 %v37_v12, %v36_v11  ;;  %v1112_v16 = vpack.c.bf16 %v39_v15, %v38_v14  ;;  %v40_v17 = vld [vmem:[#allocation2 + $0x50] sm:$0xff]  ;;  %v41_v18 = vld [vmem:[#allocation2 + $0x58] sm:$0xff]  ;;  %v42_v20 = vld [vmem:[#allocation2 + $0x60] sm:$0xff]  ;;  %p1297_p8 = scmp.ne.s32.totalorder %s774_s12, %s1296_s13  ;;  %p1302_p10 = scmp.lt.s32.totalorder %s1296_s13, %s1296_s13 }
  0x18   :  { %1102 = vmatprep.subr.bf16.mxu0 %v1325_v0  ;;  %v1115_v19 = vpack.c.bf16 %v41_v18, %v40_v17  ;;  %v43_v21 = vld [vmem:[#allocation2 + $0x68] sm:$0xff]  ;;  %v44_v23 = vld [vmem:[#allocation2 + $0x70] sm:$0xff]  ;;  %v45_v24 = vld [vmem:[#allocation2 + $0x78] sm:$0xff] }
  0x19   :  { %v1118_v22 = vpack.c.bf16 %v43_v21, %v42_v20  ;;  %v1121_v25 = vpack.c.bf16 %v45_v24, %v44_v23  ;;  %v29_v26 = vld [vmem:[%s1470_s0] sm:$0xff]  ;;  %v153_v28 = vld [vmem:[#allocation2 + $0x88] sm:$0xff]  ;;  %v154_v30 = vld [vmem:[#allocation2 + $0x90] sm:$0xff]  ;;  %p1303_p11 = por %p1302_p10, %p1301_p9 }
  0x1a   :  { %v152_v27 = vld [vmem:[#allocation2 + $0x80] sm:$0xff]  ;;  %v155_v31 = vld [vmem:[#allocation2 + $0x98] sm:$0xff]  ;;  %v157_v34 = vld [vmem:[#allocation2 + $0xa8] sm:$0xff] }
  0x1b   :  { %1104 = vmatpush3.bf16.msra.mxu0 %v1103_v7  ;;  %v1124_v29 = vpack.c.bf16 %v153_v28, %v152_v27  ;;  %v1127_v32 = vpack.c.bf16 %v155_v31, %v154_v30  ;;  %v156_v33 = vld [vmem:[#allocation2 + $0xa0] sm:$0xff]  ;;  %v158_v36 = vld [vmem:[#allocation2 + $0xb0] sm:$0xff]  ;;  %v159_v37 = vld [vmem:[#allocation2 + $0xb8] sm:$0xff]  ;;  %v136_v7 = vlaneseq  ;;  %p1304_p12 = pnand %p1303_p11, %p1297_p8 }
  0x1c   :  { %1105 = vmatprep.subr.bf16.mxu0 %v1325_v0  ;;  %v1130_v35 = vpack.c.bf16 %v157_v34, %v156_v33  ;;  %v1133_v38 = vpack.c.bf16 %v159_v37, %v158_v36  ;;  %v160_v39 = vld [vmem:[#allocation2 + $0xc0] sm:$0xff]  ;;  %v161_v40 = vld [vmem:[#allocation2 + $0xc8] sm:$0xff]  ;;  %v162_v42 = vld [vmem:[#allocation2 + $0xd0] sm:$0xff] }
  0x1d   :  { %1125 = vmatpush3.bf16.msra.mxu1 %v1124_v29  ;;  %v1136_v41 = vpack.c.bf16 %v161_v40, %v160_v39  ;;  %v163_v43 = vld [vmem:[#allocation2 + $0xd8] sm:$0xff]  ;;  %v164_v45 = vld [vmem:[#allocation2 + $0xe0] sm:$0xff]  ;;  %v165_v46 = vld [vmem:[#allocation2 + $0xe8] sm:$0xff]  ;;  %v137_v9 = vshrl.u32 %v136_v7, 7 }
  0x1e   :  { %1126 = vmatprep.subr.bf16.mxu1 %v1325_v0  ;;  %v1139_v44 = vpack.c.bf16 %v163_v43, %v162_v42  ;;  %v1142_v47 = vpack.c.bf16 %v165_v46, %v164_v45  ;;  %v166_v48 = vld [vmem:[#allocation2 + $0xf0] sm:$0xff]  ;;  %v167_v49 = vld [vmem:[#allocation2 + $0xf8] sm:$0xff]  ;;  %v132_v11 = vld [vmem:[%s1472_s2] sm:$0x3] }
  0x1f   :  { %1107 = vmatpush3.bf16.msra.mxu0 %v1106_v10  ;;  %v1145_v50 = vpack.c.bf16 %v167_v49, %v166_v48  ;;  %v1388_v10 = vsub.s32 0, %v137_v9  ;;  %v1393_v12 = vsub.s32 1, %v137_v9  ;;  %v275_v24 = vld [vmem:[#allocation2 + $0x100] sm:$0xff]  ;;  %v277_v27 = vld [vmem:[#allocation2 + $0x110] sm:$0xff]  ;;  %v278_v28 = vld [vmem:[#allocation2 + $0x118] sm:$0xff] }
  0x20   :  { %1108 = vmatprep.subr.bf16.mxu0 %v1325_v0  ;;  %v1151_v29 = vpack.c.bf16 %v278_v28, %v277_v27  ;;  %v279_v30 = vld [vmem:[#allocation2 + $0x120] sm:$0xff]  ;;  %v280_v31 = vld [vmem:[#allocation2 + $0x128] sm:$0xff]  ;;  %v281_v33 = vld [vmem:[#allocation2 + $0x130] sm:$0xff] }
  0x21   :  { %1128 = vmatpush3.bf16.msra.mxu1 %v1127_v32  ;;  %v1154_v32 = vpack.c.bf16 %v280_v31, %v279_v30  ;;  %v282_v34 = vld [vmem:[#allocation2 + $0x138] sm:$0xff]  ;;  %v283_v36 = vld [vmem:[#allocation2 + $0x140] sm:$0xff]  ;;  %v284_v37 = vld [vmem:[#allocation2 + $0x148] sm:$0xff] }
  0x22   :  { %1129 = vmatprep.subr.bf16.mxu1 %v1325_v0  ;;  %v285_v39 = vld [vmem:[#allocation2 + $0x150] sm:$0xff]  ;;  %v286_v40 = vld [vmem:[#allocation2 + $0x158] sm:$0xff]  ;;  %v287_v42 = vld [vmem:[#allocation2 + $0x160] sm:$0xff] }
  0x23   :  { %1110 = vmatpush3.bf16.msra.mxu0 %v1109_v13  ;;  %v139_v13 = vrot.slane %v132_v11, %v1388_v10  ;;  %v288_v43 = vld [vmem:[#allocation2 + $0x168] sm:$0xff]  ;;  %v289_v45 = vld [vmem:[#allocation2 + $0x170] sm:$0xff]  ;;  %v290_v46 = vld [vmem:[#allocation2 + $0x178] sm:$0xff] }
  0x24   :  { %1111 = vmatprep.subr.bf16.mxu0 %v1325_v0  ;;  %v404_v28 = vld [vmem:[#allocation2 + $0x1b0] sm:$0xff]  ;;  %v406_v31 = vld [vmem:[#allocation2 + $0x1c0] sm:$0xff] }
  0x25   :  { %1131 = vmatpush3.bf16.msra.mxu1 %v1130_v35  ;;  %v1157_v35 = vpack.c.bf16 %v282_v34, %v281_v33  ;;  %v408_v34 = vld [vmem:[#allocation2 + $0x1d0] sm:$0xff] }
  0x26   :  { %1132 = vmatprep.subr.bf16.mxu1 %v1325_v0 }
  0x27   :  { %1113 = vmatpush3.bf16.msra.mxu0 %v1112_v16  ;;  %v144_v16 = vrot.slane %v132_v11, %v1393_v12 }
  0x28   :  { %1114 = vmatprep.subr.bf16.mxu0 %v1325_v0 }
  0x29   :  { %1134 = vmatpush3.bf16.msra.mxu1 %v1133_v38  ;;  %v1160_v38 = vpack.c.bf16 %v284_v37, %v283_v36  ;;  %v410_v37 = vld [vmem:[#allocation2 + $0x1e0] sm:$0xff] }
  0x2a   :  { %1135 = vmatprep.subr.bf16.mxu1 %v1325_v0 }
  0x2b   :  { %1116 = vmatpush3.bf16.msra.mxu0 %v1115_v19 }
  0x2c   :  { %1117 = vmatprep.subr.bf16.mxu0 %v1325_v0 }
  0x2d   :  { %1137 = vmatpush3.bf16.msra.mxu1 %v1136_v41  ;;  %v1163_v41 = vpack.c.bf16 %v286_v40, %v285_v39  ;;  %v412_v40 = vld [vmem:[#allocation2 + $0x1f0] sm:$0xff] }
  0x2e   :  { %1138 = vmatprep.subr.bf16.mxu1 %v1325_v0 }
  0x2f   :  { %1119 = vmatpush3.bf16.msra.mxu0 %v1118_v22 }
  0x30   :  { %1120 = vmatprep.subr.bf16.mxu0 %v1325_v0 }
  0x31   :  { %1140 = vmatpush3.bf16.msra.mxu1 %v1139_v44  ;;  %v1166_v44 = vpack.c.bf16 %v288_v43, %v287_v42 }
  0x32   :  { %1141 = vmatprep.subr.bf16.mxu1 %v1325_v0 }
  0x33   :  { %1122 = vmatpush3.bf16.msra.mxu0 %v1121_v25  ;;  %v276_v25 = vld [vmem:[#allocation2 + $0x108] sm:$0xff] }
  0x34   :  { %1147 = vmatprep.subr.bf16.mxu0 %v1325_v0 }
  0x35   :  { %1143 = vmatpush3.bf16.msra.mxu1 %v1142_v47  ;;  %v1169_v47 = vpack.c.bf16 %v290_v46, %v289_v45 }
  0x36   :  { %922 = vmatmul.mubr.f32.vlgmr.msra.gmra.mrb[0].mxu0 %v29_v26  ;;  %1144 = vmatprep.subr.bf16.mxu1 %v1325_v0  ;;  %v1148_v26 = vpack.c.bf16 %v276_v25, %v275_v24  ;;  %v402_v25 = vld [vmem:[#allocation2 + $0x1a0] sm:$0xff] }
  0x37   :  { %991 = vmatprep.mubr.msk.f32.mxu0 %vm1326_vm0, %v1327_v1 }
  0x38   :  { %1149 = vmatpush3.bf16.msra.mxu0 %v1148_v26  ;;  %v403_v26 = vld [vmem:[#allocation2 + $0x1a8] sm:$0xff] }
  0x39   :  { %1146 = vmatpush3.bf16.msra.mxu1 %v1145_v50  ;;  %1150 = vmatprep.subr.bf16.mxu0 %v1325_v0  ;;  %v1178_v27 = vpack.c.bf16 %v403_v26, %v402_v25  ;;  %v529_v25 = vld [vmem:[#allocation2 + $0x240] sm:$0xff]  ;;  %v530_v26 = vld [vmem:[#allocation2 + $0x248] sm:$0xff] }
  0x3a   :  { %1171 = vmatprep.subr.bf16.mxu1 %v1325_v0 }
  0x3c   :  { %1152 = vmatpush3.bf16.msra.mxu0 %v1151_v29  ;;  %v405_v29 = vld [vmem:[#allocation2 + $0x1b8] sm:$0xff] }
  0x3d   :  { %1153 = vmatprep.subr.bf16.mxu0 %v1325_v0  ;;  %v1181_v30 = vpack.c.bf16 %v405_v29, %v404_v28  ;;  %v531_v28 = vld [vmem:[#allocation2 + $0x250] sm:$0xff]  ;;  %v532_v29 = vld [vmem:[#allocation2 + $0x258] sm:$0xff] }
  0x40   :  { %1155 = vmatpush3.bf16.msra.mxu0 %v1154_v32  ;;  %v407_v32 = vld [vmem:[#allocation2 + $0x1c8] sm:$0xff] }
  0x41   :  { %1156 = vmatprep.subr.bf16.mxu0 %v1325_v0  ;;  %v1184_v33 = vpack.c.bf16 %v407_v32, %v406_v31  ;;  %v533_v31 = vld [vmem:[#allocation2 + $0x260] sm:$0xff]  ;;  %v534_v32 = vld [vmem:[#allocation2 + $0x268] sm:$0xff] }
  0x44   :  { %1158 = vmatpush3.bf16.msra.mxu0 %v1157_v35  ;;  %v409_v35 = vld [vmem:[#allocation2 + $0x1d8] sm:$0xff] }
  0x45   :  { %1159 = vmatprep.subr.bf16.mxu0 %v1325_v0  ;;  %v1187_v36 = vpack.c.bf16 %v409_v35, %v408_v34  ;;  %v535_v34 = vld [vmem:[#allocation2 + $0x270] sm:$0xff]  ;;  %v536_v35 = vld [vmem:[#allocation2 + $0x278] sm:$0xff] }
  0x48   :  { %1161 = vmatpush3.bf16.msra.mxu0 %v1160_v38  ;;  %v411_v38 = vld [vmem:[#allocation2 + $0x1e8] sm:$0xff] }
  0x49   :  { %1162 = vmatprep.subr.bf16.mxu0 %v1325_v0  ;;  %v1190_v39 = vpack.c.bf16 %v411_v38, %v410_v37 }
  0x4c   :  { %1164 = vmatpush3.bf16.msra.mxu0 %v1163_v41  ;;  %v413_v41 = vld [vmem:[#allocation2 + $0x1f8] sm:$0xff] }
  0x4d   :  { %1165 = vmatprep.subr.bf16.mxu0 %v1325_v0  ;;  %v1193_v42 = vpack.c.bf16 %v413_v41, %v412_v40 }
  0x50   :  { %1167 = vmatpush3.bf16.msra.mxu0 %v1166_v44 }
  0x51   :  { %1168 = vmatprep.subr.bf16.mxu0 %v1325_v0 }
  0x54   :  { %1170 = vmatpush3.bf16.msra.mxu0 %v1169_v47 }
  0x55   :  { %1195 = vmatprep.subr.bf16.mxu0 %v1325_v0 }
 0x109   :  { %v112_v51 = vpop.f32.mrb[0].mxu0 }
 0x10a   :  { %v116_v52 = vrot.slane %v112_v51, 4  ;;  %v923_v53 = vpop.f32.mrb[1].mxu0 }
 0x10c   :  { %v117_v54 = vadd.f32 %v116_v52, %v112_v51 }
 0x10e   :  { %v118_v55 = vrot.slane %v117_v54, 2 }
 0x110   :  { %v119_v56 = vadd.f32 %v118_v55, %v117_v54 }
 0x112   :  { %v120_v57 = vrot.slane %v119_v56, 1 }
 0x114   :  { %v121_v58 = vadd.f32 %v120_v57, %v119_v56 }
 0x116   :  { %v122_v59 = vmul.f32 0.125, %v121_v58 }
 0x118   :  { %v123_v60 = vsub.f32 %v112_v51, %v122_v59 }
 0x11a   :  { %v124_v61 = vmul.f32 %v123_v60, %v123_v60 }
 0x11c   :  { %v125_v62 = vrot.slane %v124_v61, 4 }
 0x11e   :  { %v126_v63 = vadd.f32 %v125_v62, %v124_v61 }
 0x120   :  { %v127_v2 = vrot.slane %v126_v63, 2 }
 0x122   :  { %v128_v3 = vadd.f32 %v127_v2, %v126_v63 }
 0x124   :  { %v129_v4 = vrot.slane %v128_v3, 1 }
 0x126   :  { %v130_v5 = vadd.f32 %v129_v4, %v128_v3 }
 0x128   :  { %v131_v6 = vmul.f32 0.125, %v130_v5  ;;  %v782_v5 = vld [vmem:[%s1472_s2 + $0x2] sm:$0x3] }
 0x129   :  { %v267_v9 = vrot.slane %v782_v5, %v1393_v12 }
 0x12a   :  { %v133_v8 = vadd.f32 1e-05, %v131_v6  ;;  %v262_v6 = vrot.slane %v782_v5, %v1388_v10 }
 0x12c   :  { %1250 = vrsqrt.f32 %v133_v8 }
 0x136   :  { %v1251_v14 = vpop.eup %1250 }
 0x137   :  { %v135_v15 = vmul.f32 %v1251_v14, %v123_v60 }
 0x139   :  { %v140_v17 = vmul.f32 %v139_v13, %v135_v15 }
 0x13b   :  { %v145_v18 = vadd.f32 %v144_v16, %v140_v17 }
 0x13d   :  { %v147_v19 = vmul.f32 0.70710677, %v145_v18  ;;  %v146_v21 = vmul.f32 0.5, %v145_v18 }
 0x13f   :  { %1252 = verf.f32 %v147_v19  ;;  %v398_v19 = vld [vmem:[#allocation2 + $0x180] sm:$0xff] }
 0x149   :  { %v1253_v20 = vpop.eup %1252 }
 0x14a   :  { %v149_v22 = vadd.f32 1.0, %v1253_v20  ;;  %v399_v20 = vld [vmem:[#allocation2 + $0x188] sm:$0xff] }
 0x14c   :  { %v150_v23 = vmul.f32 %v149_v22, %v146_v21  ;;  %v1172_v21 = vpack.c.bf16 %v399_v20, %v398_v19  ;;  %v400_v22 = vld [vmem:[#allocation2 + $0x190] sm:$0xff]  ;;  %v525_v20 = vld [vmem:[#allocation2 + $0x220] sm:$0xff] }
 0x14e   :  { %957 = vmatmul.mubr.f32.vlgmr.msra.gmra.mrb[0].mxu1 %v150_v23  ;;  %v401_v23 = vld [vmem:[#allocation2 + $0x198] sm:$0xff] }
 0x14f   :  { %1026 = vmatprep.mubr.msk.f32.mxu1 %vm1326_vm0, %v1327_v1  ;;  %1173 = vmatpush3.bf16.msra.mxu1 %v1172_v21  ;;  %v1175_v24 = vpack.c.bf16 %v401_v23, %v400_v22  ;;  %v526_v21 = vld [vmem:[#allocation2 + $0x228] sm:$0xff]  ;;  %v527_v23 = vld [vmem:[#allocation2 + $0x230] sm:$0xff] }
 0x150   :  { %1174 = vmatprep.subr.bf16.mxu1 %v1325_v0  ;;  %v1202_v22 = vpack.c.bf16 %v526_v21, %v525_v20  ;;  %v652_v20 = vld [vmem:[#allocation2 + $0x2c0] sm:$0xff]  ;;  %v653_v21 = vld [vmem:[#allocation2 + $0x2c8] sm:$0xff] }
 0x153   :  { %1176 = vmatpush3.bf16.msra.mxu1 %v1175_v24 }
 0x154   :  { %1177 = vmatprep.subr.bf16.mxu1 %v1325_v0 }
 0x157   :  { %1179 = vmatpush3.bf16.msra.mxu1 %v1178_v27  ;;  %v1208_v27 = vpack.c.bf16 %v530_v26, %v529_v25  ;;  %v656_v25 = vld [vmem:[#allocation2 + $0x2e0] sm:$0xff]  ;;  %v657_v26 = vld [vmem:[#allocation2 + $0x2e8] sm:$0xff] }
 0x158   :  { %1180 = vmatprep.subr.bf16.mxu1 %v1325_v0 }
 0x15b   :  { %1182 = vmatpush3.bf16.msra.mxu1 %v1181_v30  ;;  %v1211_v30 = vpack.c.bf16 %v532_v29, %v531_v28  ;;  %v658_v28 = vld [vmem:[#allocation2 + $0x2f0] sm:$0xff]  ;;  %v659_v29 = vld [vmem:[#allocation2 + $0x2f8] sm:$0xff] }
 0x15c   :  { %1183 = vmatprep.subr.bf16.mxu1 %v1325_v0 }
 0x15f   :  { %1185 = vmatpush3.bf16.msra.mxu1 %v1184_v33  ;;  %v1214_v33 = vpack.c.bf16 %v534_v32, %v533_v31 }
 0x160   :  { %1186 = vmatprep.subr.bf16.mxu1 %v1325_v0 }
 0x163   :  { %1188 = vmatpush3.bf16.msra.mxu1 %v1187_v36  ;;  %v1217_v36 = vpack.c.bf16 %v536_v35, %v535_v34 }
 0x164   :  { %1189 = vmatprep.subr.bf16.mxu1 %v1325_v0 }
 0x167   :  { %1191 = vmatpush3.bf16.msra.mxu1 %v1190_v39 }
 0x168   :  { %1192 = vmatprep.subr.bf16.mxu1 %v1325_v0 }
 0x16b   :  { %1194 = vmatpush3.bf16.msra.mxu1 %v1193_v42 }
 0x16c   :  { %1219 = vmatprep.subr.bf16.mxu1 %v1325_v0 }
 0x221   :  { %v234_v48 = vpop.f32.mrb[0].mxu1 }
 0x222   :  { %v238_v49 = vrot.slane %v234_v48, 4  ;;  %v958_v50 = vpop.f32.mrb[1].mxu1 }
 0x224   :  { %v239_v51 = vadd.f32 %v238_v49, %v234_v48 }
 0x226   :  { %v240_v52 = vrot.slane %v239_v51, 2 }
 0x228   :  { %v241_v53 = vadd.f32 %v240_v52, %v239_v51 }
 0x22a   :  { %v242_v54 = vrot.slane %v241_v53, 1 }
 0x22c   :  { %v243_v55 = vadd.f32 %v242_v54, %v241_v53 }
 0x22e   :  { %v244_v56 = vmul.f32 0.125, %v243_v55 }
 0x230   :  { %v245_v57 = vsub.f32 %v234_v48, %v244_v56 }
 0x232   :  { %v246_v58 = vmul.f32 %v245_v57, %v245_v57 }
 0x234   :  { %v247_v59 = vrot.slane %v246_v58, 4 }
 0x236   :  { %v248_v60 = vadd.f32 %v247_v59, %v246_v58 }
 0x238   :  { %v249_v61 = vrot.slane %v248_v60, 2 }
 0x23a   :  { %v250_v62 = vadd.f32 %v249_v61, %v248_v60 }
 0x23c   :  { %v251_v63 = vrot.slane %v250_v62, 1 }
 0x23e   :  { %v252_v2 = vadd.f32 %v251_v63, %v250_v62  ;;  %v783_v62 = vld [vmem:[%s1472_s2 + $0x4] sm:$0x3] }
 0x23f   :  { %v385_v63 = vrot.slane %v783_v62, %v1388_v10 }
 0x240   :  { %v253_v3 = vmul.f32 0.125, %v252_v2 }
 0x242   :  { %v256_v4 = vadd.f32 1e-05, %v253_v3 }
 0x244   :  { %1254 = vrsqrt.f32 %v256_v4  ;;  %v390_v4 = vrot.slane %v783_v62, %v1393_v12 }
 0x24e   :  { %v1255_v7 = vpop.eup %1254 }
 0x24f   :  { %v258_v8 = vmul.f32 %v1255_v7, %v245_v57 }
 0x251   :  { %v263_v11 = vmul.f32 %v262_v6, %v258_v8 }
 0x253   :  { %v268_v13 = vadd.f32 %v267_v9, %v263_v11 }
 0x255   :  { %v270_v14 = vmul.f32 0.70710677, %v268_v13  ;;  %v269_v16 = vmul.f32 0.5, %v268_v13 }
 0x257   :  { %1256 = verf.f32 %v270_v14  ;;  %v521_v14 = vld [vmem:[#allocation2 + $0x200] sm:$0xff] }
 0x261   :  { %v1257_v15 = vpop.eup %1256 }
 0x262   :  { %v272_v17 = vadd.f32 1.0, %v1257_v15  ;;  %v522_v15 = vld [vmem:[#allocation2 + $0x208] sm:$0xff] }
 0x264   :  { %v273_v18 = vmul.f32 %v272_v17, %v269_v16  ;;  %v1196_v16 = vpack.c.bf16 %v522_v15, %v521_v14  ;;  %v523_v17 = vld [vmem:[#allocation2 + $0x210] sm:$0xff]  ;;  %v648_v14 = vld [vmem:[#allocation2 + $0x2a0] sm:$0xff]  ;;  %v649_v15 = vld [vmem:[#allocation2 + $0x2a8] sm:$0xff] }
 0x266   :  { %992 = vmatmul.mubr.f32.vlgmr.msra.gmra.mrb[2].mxu0 %v273_v18  ;;  %v524_v18 = vld [vmem:[#allocation2 + $0x218] sm:$0xff] }
 0x267   :  { %1061 = vmatprep.mubr.msk.f32.mxu0 %vm1326_vm0, %v1327_v1  ;;  %1197 = vmatpush3.bf16.msra.mxu0 %v1196_v16  ;;  %v1199_v19 = vpack.c.bf16 %v524_v18, %v523_v17  ;;  %v1226_v16 = vpack.c.bf16 %v649_v15, %v648_v14  ;;  %v650_v17 = vld [vmem:[#allocation2 + $0x2b0] sm:$0xff]  ;;  %v651_v18 = vld [vmem:[#allocation2 + $0x2b8] sm:$0xff] }
 0x268   :  { %1198 = vmatprep.subr.bf16.mxu0 %v1325_v0 }
 0x26b   :  { %1200 = vmatpush3.bf16.msra.mxu0 %v1199_v19  ;;  %v1229_v19 = vpack.c.bf16 %v651_v18, %v650_v17 }
 0x26c   :  { %1201 = vmatprep.subr.bf16.mxu0 %v1325_v0 }
 0x26f   :  { %1203 = vmatpush3.bf16.msra.mxu0 %v1202_v22  ;;  %v1232_v22 = vpack.c.bf16 %v653_v21, %v652_v20  ;;  %v786_v20 = vld [vmem:[%s1472_s2 + $0xa] sm:$0x3] }
 0x270   :  { %1204 = vmatprep.subr.bf16.mxu0 %v1325_v0  ;;  %v754_v21 = vrot.slane %v786_v20, %v1388_v10 }
 0x339   :  { %v357_v43 = vpop.f32.mrb[2].mxu0 }
 0x33a   :  { %v361_v44 = vrot.slane %v357_v43, 4  ;;  %v993_v45 = vpop.f32.mrb[3].mxu0 }
 0x33c   :  { %v362_v46 = vadd.f32 %v361_v44, %v357_v43 }
 0x33e   :  { %v363_v47 = vrot.slane %v362_v46, 2 }
 0x340   :  { %v364_v48 = vadd.f32 %v363_v47, %v362_v46 }
 0x342   :  { %v365_v49 = vrot.slane %v364_v48, 1 }
 0x344   :  { %v366_v50 = vadd.f32 %v365_v49, %v364_v48 }
 0x346   :  { %v367_v51 = vmul.f32 0.125, %v366_v50 }
 0x348   :  { %v368_v52 = vsub.f32 %v357_v43, %v367_v51 }
 0x34a   :  { %v369_v53 = vmul.f32 %v368_v52, %v368_v52 }
 0x34c   :  { %v370_v54 = vrot.slane %v369_v53, 4 }
 0x34e   :  { %v371_v55 = vadd.f32 %v370_v54, %v369_v53 }
 0x350   :  { %v372_v56 = vrot.slane %v371_v55, 2 }
 0x352   :  { %v373_v57 = vadd.f32 %v372_v56, %v371_v55  ;;  %v784_v56 = vld [vmem:[%s1472_s2 + $0x6] sm:$0x3] }
 0x354   :  { %v374_v58 = vrot.slane %v373_v57, 1 }
 0x356   :  { %v375_v59 = vadd.f32 %v374_v58, %v373_v57  ;;  %v508_v57 = vrot.slane %v784_v56, %v1388_v10 }
 0x358   :  { %v376_v60 = vmul.f32 0.125, %v375_v59 }
 0x35a   :  { %v379_v61 = vadd.f32 1e-05, %v376_v60  ;;  %v513_v60 = vrot.slane %v784_v56, %v1393_v12 }
 0x35c   :  { %1258 = vrsqrt.f32 %v379_v61 }
 0x366   :  { %v1259_v2 = vpop.eup %1258 }
 0x367   :  { %v381_v3 = vmul.f32 %v1259_v2, %v368_v52 }
 0x369   :  { %v386_v5 = vmul.f32 %v385_v63, %v381_v3 }
 0x36b   :  { %v391_v6 = vadd.f32 %v390_v4, %v386_v5 }
 0x36d   :  { %v393_v7 = vmul.f32 0.70710677, %v391_v6  ;;  %v392_v9 = vmul.f32 0.5, %v391_v6  ;;  %v644_v6 = vld [vmem:[#allocation2 + $0x280] sm:$0xff] }
 0x36f   :  { %1260 = verf.f32 %v393_v7  ;;  %v645_v7 = vld [vmem:[#allocation2 + $0x288] sm:$0xff] }
 0x379   :  { %v1261_v8 = vpop.eup %1260 }
 0x37a   :  { %v395_v11 = vadd.f32 1.0, %v1261_v8  ;;  %v1220_v8 = vpack.c.bf16 %v645_v7, %v644_v6 }
 0x37c   :  { %v396_v13 = vmul.f32 %v395_v11, %v392_v9  ;;  %v646_v9 = vld [vmem:[#allocation2 + $0x290] sm:$0xff]  ;;  %v647_v11 = vld [vmem:[#allocation2 + $0x298] sm:$0xff] }
 0x37e   :  { %1027 = vmatmul.mubr.f32.vlgmr.msra.gmra.mrb[2].mxu1 %v396_v13  ;;  %v1223_v13 = vpack.c.bf16 %v647_v11, %v646_v9 }
 0x37f   :  { %1096 = vmatprep.mubr.msk.f32.mxu1 %vm1326_vm0, %v1327_v1  ;;  %v528_v1 = vld [vmem:[#allocation2 + $0x238] sm:$0xff]  ;;  %1221 = vmatpush3.bf16.msra.mxu1 %v1220_v8 }
 0x380   :  { %v1205_v24 = vpack.c.bf16 %v528_v1, %v527_v23  ;;  %1222 = vmatprep.subr.bf16.mxu1 %v1325_v0  ;;  %v654_v23 = vld [vmem:[#allocation2 + $0x2d0] sm:$0xff]  ;;  %v655_v1 = vld [vmem:[#allocation2 + $0x2d8] sm:$0xff] }
 0x382   :  { %1206 = vmatpush3.bf16.msra.mxu0 %v1205_v24  ;;  %v1235_v24 = vpack.c.bf16 %v655_v1, %v654_v23  ;;  %v759_v1 = vrot.slane %v786_v20, %v1393_v12 }
 0x383   :  { %1207 = vmatprep.subr.bf16.mxu0 %v1325_v0  ;;  %1224 = vmatpush3.bf16.msra.mxu1 %v1223_v13 }
 0x384   :  { %1225 = vmatprep.subr.bf16.mxu1 %v1325_v0 }
 0x386   :  { %1209 = vmatpush3.bf16.msra.mxu0 %v1208_v27  ;;  %v1238_v27 = vpack.c.bf16 %v657_v26, %v656_v25 }
 0x387   :  { %1210 = vmatprep.subr.bf16.mxu0 %v1325_v0  ;;  %1227 = vmatpush3.bf16.msra.mxu1 %v1226_v16 }
 0x388   :  { %1228 = vmatprep.subr.bf16.mxu1 %v1325_v0 }
 0x38a   :  { %1212 = vmatpush3.bf16.msra.mxu0 %v1211_v30  ;;  %v1241_v30 = vpack.c.bf16 %v659_v29, %v658_v28 }
 0x38b   :  { %1213 = vmatprep.subr.bf16.mxu0 %v1325_v0  ;;  %1230 = vmatpush3.bf16.msra.mxu1 %v1229_v19 }
 0x38c   :  { %1231 = vmatprep.subr.bf16.mxu1 %v1325_v0 }
 0x38e   :  { %1215 = vmatpush3.bf16.msra.mxu0 %v1214_v33 }
 0x38f   :  { %1216 = vmatprep.subr.bf16.mxu0 %v1325_v0  ;;  %1233 = vmatpush3.bf16.msra.mxu1 %v1232_v22 }
 0x390   :  { %1234 = vmatprep.subr.bf16.mxu1 %v1325_v0 }
 0x392   :  { %1218 = vmatpush3.bf16.msra.mxu0 %v1217_v36 }
 0x393   :  { %1236 = vmatpush3.bf16.msra.mxu1 %v1235_v24 }
 0x394   :  { %1237 = vmatprep.subr.bf16.mxu1 %v1325_v0 }
 0x397   :  { %1239 = vmatpush3.bf16.msra.mxu1 %v1238_v27 }
 0x398   :  { %1240 = vmatprep.subr.bf16.mxu1 %v1325_v0 }
 0x39b   :  { %1242 = vmatpush3.bf16.msra.mxu1 %v1241_v30 }
 0x451   :  { %v480_v37 = vpop.f32.mrb[2].mxu1 }
 0x452   :  { %v484_v38 = vrot.slane %v480_v37, 4  ;;  %v1028_v39 = vpop.f32.mrb[3].mxu1 }
 0x454   :  { %v485_v40 = vadd.f32 %v484_v38, %v480_v37 }
 0x456   :  { %v486_v41 = vrot.slane %v485_v40, 2 }
 0x458   :  { %v487_v42 = vadd.f32 %v486_v41, %v485_v40 }
 0x45a   :  { %v488_v43 = vrot.slane %v487_v42, 1 }
 0x45c   :  { %v489_v44 = vadd.f32 %v488_v43, %v487_v42 }
 0x45e   :  { %v490_v45 = vmul.f32 0.125, %v489_v44 }
 0x460   :  { %v491_v46 = vsub.f32 %v480_v37, %v490_v45 }
 0x462   :  { %v492_v47 = vmul.f32 %v491_v46, %v491_v46 }
 0x464   :  { %v493_v48 = vrot.slane %v492_v47, 4 }
 0x466   :  { %v494_v49 = vadd.f32 %v493_v48, %v492_v47 }
 0x468   :  { %v495_v50 = vrot.slane %v494_v49, 2 }
 0x46a   :  { %v496_v51 = vadd.f32 %v495_v50, %v494_v49  ;;  %v785_v49 = vld [vmem:[%s1472_s2 + $0x8] sm:$0x3] }
 0x46b   :  { %v631_v50 = vrot.slane %v785_v49, %v1388_v10 }
 0x46c   :  { %v497_v52 = vrot.slane %v496_v51, 1 }
 0x46e   :  { %v498_v53 = vadd.f32 %v497_v52, %v496_v51 }
 0x470   :  { %v499_v54 = vmul.f32 0.125, %v498_v53  ;;  %v636_v53 = vrot.slane %v785_v49, %v1393_v12 }
 0x472   :  { %v502_v55 = vadd.f32 1e-05, %v499_v54 }
 0x474   :  { %1262 = vrsqrt.f32 %v502_v55 }
 0x47e   :  { %v1263_v58 = vpop.eup %1262 }
 0x47f   :  { %v504_v59 = vmul.f32 %v1263_v58, %v491_v46 }
 0x481   :  { %v509_v61 = vmul.f32 %v508_v57, %v504_v59 }
 0x483   :  { %v514_v62 = vadd.f32 %v513_v60, %v509_v61 }
 0x485   :  { %v516_v63 = vmul.f32 0.70710677, %v514_v62  ;;  %v515_v3 = vmul.f32 0.5, %v514_v62 }
 0x487   :  { %1264 = verf.f32 %v516_v63 }
 0x491   :  { %v1265_v2 = vpop.eup %1264 }
 0x492   :  { %v518_v4 = vadd.f32 1.0, %v1265_v2 }
 0x494   :  { %v519_v5 = vmul.f32 %v518_v4, %v515_v3 }
 0x496   :  { %1062 = vmatmul.mubr.f32.vlgmr.msra.gmra.mrb[4].mxu0 %v519_v5 }
 0x569   :  { %v603_v31 = vpop.f32.mrb[4].mxu0 }
 0x56a   :  { %v607_v32 = vrot.slane %v603_v31, 4  ;;  %v1063_v33 = vpop.f32.mrb[5].mxu0 }
 0x56c   :  { %v608_v34 = vadd.f32 %v607_v32, %v603_v31 }
 0x56e   :  { %v609_v35 = vrot.slane %v608_v34, 2 }
 0x570   :  { %v610_v36 = vadd.f32 %v609_v35, %v608_v34 }
 0x572   :  { %v611_v37 = vrot.slane %v610_v36, 1 }
 0x574   :  { %v612_v38 = vadd.f32 %v611_v37, %v610_v36 }
 0x576   :  { %v613_v39 = vmul.f32 0.125, %v612_v38 }
 0x578   :  { %v614_v40 = vsub.f32 %v603_v31, %v613_v39 }
 0x57a   :  { %v615_v41 = vmul.f32 %v614_v40, %v614_v40 }
 0x57c   :  { %v616_v42 = vrot.slane %v615_v41, 4 }
 0x57e   :  { %v617_v43 = vadd.f32 %v616_v42, %v615_v41 }
 0x580   :  { %v618_v44 = vrot.slane %v617_v43, 2 }
 0x582   :  { %v619_v45 = vadd.f32 %v618_v44, %v617_v43 }
 0x584   :  { %v620_v46 = vrot.slane %v619_v45, 1 }
 0x586   :  { %v621_v47 = vadd.f32 %v620_v46, %v619_v45 }
 0x588   :  { %v622_v48 = vmul.f32 0.125, %v621_v47 }
 0x58a   :  { %v625_v0 = vadd.f32 1e-05, %v622_v48 }
 0x58c   :  { %1266 = vrsqrt.f32 %v625_v0 }
 0x596   :  { %v1267_v51 = vpop.eup %1266 }
 0x597   :  { %v627_v52 = vmul.f32 %v1267_v51, %v614_v40 }
 0x599   :  { %v632_v54 = vmul.f32 %v631_v50, %v627_v52 }
 0x59b   :  { %v637_v55 = vadd.f32 %v636_v53, %v632_v54 }
 0x59d   :  { %v639_v56 = vmul.f32 0.70710677, %v637_v55  ;;  %v638_v58 = vmul.f32 0.5, %v637_v55 }
 0x59f   :  { %1268 = verf.f32 %v639_v56 }
 0x5a9   :  { %v1269_v57 = vpop.eup %1268 }
 0x5aa   :  { %v641_v59 = vadd.f32 1.0, %v1269_v57 }
 0x5ac   :  { %v642_v60 = vmul.f32 %v641_v59, %v638_v58 }
 0x5ae   :  { %1097 = vmatmul.mubr.f32.vlgmr.msra.gmra.mrb[4].mxu1 %v642_v60 }
 0x681   :  { %v726_v61 = vpop.f32.mrb[4].mxu1 }
 0x682   :  { %v730_v62 = vrot.slane %v726_v61, 4  ;;  %v1098_v63 = vpop.f32.mrb[5].mxu1 }
 0x684   :  { %v731_v2 = vadd.f32 %v730_v62, %v726_v61 }
 0x686   :  { %v732_v3 = vrot.slane %v731_v2, 2 }
 0x688   :  { %v733_v4 = vadd.f32 %v732_v3, %v731_v2 }
 0x68a   :  { %v734_v5 = vrot.slane %v733_v4, 1 }
 0x68c   :  { %v735_v6 = vadd.f32 %v734_v5, %v733_v4 }
 0x68e   :  { %v736_v7 = vmul.f32 0.125, %v735_v6 }
 0x690   :  { %v737_v8 = vsub.f32 %v726_v61, %v736_v7 }
 0x692   :  { %v738_v9 = vmul.f32 %v737_v8, %v737_v8 }
 0x694   :  { %v739_v11 = vrot.slane %v738_v9, 4 }
 0x696   :  { %v740_v13 = vadd.f32 %v739_v11, %v738_v9 }
 0x698   :  { %v741_v14 = vrot.slane %v740_v13, 2 }
 0x69a   :  { %v742_v15 = vadd.f32 %v741_v14, %v740_v13 }
 0x69c   :  { %v743_v16 = vrot.slane %v742_v15, 1 }
 0x69e   :  { %v744_v17 = vadd.f32 %v743_v16, %v742_v15 }
 0x6a0   :  { %v745_v18 = vmul.f32 0.125, %v744_v17 }
 0x6a2   :  { %v748_v19 = vadd.f32 1e-05, %v745_v18 }
 0x6a4   :  { %1270 = vrsqrt.f32 %v748_v19 }
 0x6ae   :  { %v1271_v22 = vpop.eup %1270 }
 0x6af   :  { %v750_v23 = vmul.f32 %v1271_v22, %v737_v8 }
 0x6b1   :  { %v755_v24 = vmul.f32 %v754_v21, %v750_v23 }
 0x6b3   :  { %v760_v25 = vadd.f32 %v759_v1, %v755_v24 }
 0x6b5   :  { %v762_v26 = vmul.f32 0.70710677, %v760_v25  ;;  %v761_v28 = vmul.f32 0.5, %v760_v25 }
 0x6b7   :  { %1272 = verf.f32 %v762_v26 }
 0x6c1   :  { %v1273_v27 = vpop.eup %1272 }
 0x6c2   :  { %v764_v29 = vadd.f32 1.0, %v1273_v27 }
 0x6c4   :  { %v765_v30 = vmul.f32 %v764_v29, %v761_v28 }
 0x6c6   :  { %766 = vst [vmem:[#allocation5] sm:$0xff] %v765_v30 }
 0x6c7   :  { %1307 = shalt.err (!%p1304_p12)
}
 0x6c8   :  { %s1308_s15 = scalar_lea.hbm %s1473_s3, 128 }
 0x6c9   :  { %p1309_p13 = scmp.ne.s32.totalorder %s1473_s3, %s1308_s15  ;;  %p1312_p0 = scmp.lt.u32.totalorder %s1308_s15, %s1473_s3 }
 0x6cb   :  { %p1314_p1 = pnand %p1312_p0, %p1309_p13 }
 0x6cd   :  { %1317 = shalt.err (!%p1314_p1)
}
 0x6ce   :  { %776 = dma.vmem_to_hbm [thread:$0]  %s774_s12, 128, %s1473_s3, [#allocation4]  }
 0x6cf   :  { %1320 = dma.done.wait [#allocation4], 128  }
 0x6d0   :  { %1321 = vsyncadd [#allocation4], 4294967168 }
 0x6d1   :  { %780 = vsyncpa [#allocation3], 1 }
 0x6d2   :  { %781 = vsyncpa [#allocation4], 1 }

</bundles_post_ra>
